<compile_context>
chip_gen: v7x
topology: tpu7x:2x2x1
jax: 0.10.0
libtpu: 0.0.40
codegen_flags: <defaults>
</compile_context>

<pallas_src>
from types import SimpleNamespace

import numpy as np
import jax
import jax.numpy as jnp
from jax.experimental import pallas as pl
from jax.experimental.pallas import tpu as pltpu


# ----------------------------------------------------------------------------
# Parameters (deterministic, torch.nn.Linear-style uniform init)
# ----------------------------------------------------------------------------
def init_params(key, config):
    J = config.num_language_layers * 2
    L = config.num_encoder_layers
    De = config.encoder_hidden_dim
    Dl = config.language_hidden_dim
    ks = jax.random.split(key, 6)

    def lin(kw, kb, out_f, in_f):
        bound = 1.0 / (in_f ** 0.5)
        w = jax.random.uniform(kw, (out_f, in_f), jnp.float32, -bound, bound)
        b = jax.random.uniform(kb, (out_f,), jnp.float32, -bound, bound)
        return w, b

    p = {}
    p["w1"], p["b1"] = lin(ks[0], ks[1], J, L)     # fc1: L_enc -> 2*L_lang
    p["w2"], p["b2"] = lin(ks[2], ks[3], Dl, De)   # fc2: D_enc -> D_lang
    if config.structure == "MLP":
        p["w3"], p["b3"] = lin(ks[4], ks[5], Dl, Dl)
    return p


def _round_up(v, m):
    return (v + m - 1) // m * m


# ----------------------------------------------------------------------------
# WeightedLinearProjector forward — Pallas kernel
# ----------------------------------------------------------------------------
def weighted_linear_projector(x, params, structure, *,
                              compute_dtype=jnp.bfloat16, t_tile=None):
    """x: (B, L_enc, T, D_enc) -> (2*L_lang, B, T, D_lang)  (final pkv layout)."""
    B, L, T, De = x.shape
    w1, b1 = params["w1"], params["b1"]            # (J, L), (J,)
    w2, b2 = params["w2"], params["b2"]            # (Dl, De), (Dl,)
    use_mlp = structure == "MLP"
    J = w1.shape[0]
    Dl = w2.shape[0]

    # --- token tiling: aim for M = t_tile*J ~ 256 (MXU-shaped), multiple of 8 ---
    if t_tile is None:
        t_tile = max(8, min(512, ((256 // max(J, 1)) // 8) * 8))
    t_tile = min(t_tile, _round_up(T, 8))
    t_tile = max(8, (t_tile // 8) * 8)
    T_pad = _round_up(T, t_tile)
    if T_pad != T:
        # pad token axis with zeros; padded rows are sliced off after the call.
        x = jnp.pad(x, ((0, 0), (0, 0), (0, T_pad - T), (0, 0)))
    num_tb = T_pad // t_tile

    # --- weight / bias prep (weights cast for the MXU; biases stay f32) ---
    w2t = jnp.asarray(w2).T.astype(compute_dtype)            # (De, Dl)
    b2r = jnp.asarray(b2).reshape(1, Dl).astype(jnp.float32)
    w1s = jnp.asarray(w1).astype(jnp.float32)                # SMEM scalars
    b1s = jnp.asarray(b1).astype(jnp.float32)

    args = [w1s, b1s, x, w2t, b2r]
    in_specs = [
        pl.BlockSpec(memory_space=pltpu.MemorySpace.SMEM),          # w1 (J, L)
        pl.BlockSpec(memory_space=pltpu.MemorySpace.SMEM),          # b1 (J,)
        # read x in its native layout: one (L, t_tile, De) slab per step
        pl.BlockSpec((None, L, t_tile, De), lambda b, t: (b, 0, t, 0)),
        pl.BlockSpec((De, Dl), lambda b, t: (0, 0)),                # grid-invariant
        pl.BlockSpec((1, Dl), lambda b, t: (0, 0)),
    ]
    if use_mlp:
        w3t = jnp.asarray(params["w3"]).T.astype(compute_dtype)     # (Dl, Dl)
        b3r = jnp.asarray(params["b3"]).reshape(1, Dl).astype(jnp.float32)
        args += [w3t, b3r]
        in_specs += [
            pl.BlockSpec((Dl, Dl), lambda b, t: (0, 0)),
            pl.BlockSpec((1, Dl), lambda b, t: (0, 0)),
        ]

    def kernel(w1_ref, b1_ref, x_ref, w2t_ref, b2_ref, *rest):
        if use_mlp:
            w3t_ref, b3_ref, o_ref = rest
        else:
            (o_ref,) = rest

        # ---- fc1 (L_enc -> J) on the VPU: J*L scalar-broadcast FMAs + ReLU ----
        xs = [x_ref[l].astype(jnp.float32) for l in range(L)]   # each (t_tile, De)
        rows = []
        for j in range(J):
            acc = xs[0] * w1_ref[j, 0]
            for l in range(1, L):
                acc = acc + xs[l] * w1_ref[j, l]
            rows.append(jnp.maximum(acc + b1_ref[j], 0.0))
        y = jnp.concatenate(rows, axis=0)                       # (J*t_tile, De) f32

        # ---- fc2 (+ ReLU + fc3) on the MXU: one big matmul per step ----
        z = jnp.dot(y.astype(compute_dtype), w2t_ref[...],
                    preferred_element_type=jnp.float32) + b2_ref[...]
        if use_mlp:
            z = jnp.maximum(z, 0.0)
            z = jnp.dot(z.astype(compute_dtype), w3t_ref[...],
                        preferred_element_type=jnp.float32) + b3_ref[...]

        # ---- store directly in the final (J, B, T, Dl) layout ----
        for j in range(J):
            o_ref[j] = z[j * t_tile:(j + 1) * t_tile, :].astype(o_ref.dtype)

    # --- VMEM budget: double-buffered x/out tiles + weights + intermediates ---
    w_item = jnp.dtype(compute_dtype).itemsize
    x_tile_b = L * t_tile * De * 4
    o_tile_b = J * t_tile * Dl * 4
    w_b = De * Dl * w_item + Dl * 4
    if use_mlp:
        w_b += Dl * Dl * w_item + Dl * 4
    interm_b = J * t_tile * (De + 2 * Dl) * 4
    need = 2 * (x_tile_b + o_tile_b) + 2 * w_b + interm_b
    vmem_limit = int(min(max(4 * need, 8 << 20), 64 << 20))

    out = pl.pallas_call(
        kernel,
        out_shape=jax.ShapeDtypeStruct((J, B, T_pad, Dl), jnp.float32),
        grid=(B, num_tb),
        in_specs=in_specs,
        out_specs=pl.BlockSpec((J, None, t_tile, Dl), lambda b, t: (0, b, t, 0)),
        compiler_params=pltpu.CompilerParams(
            dimension_semantics=("parallel", "parallel"),
            vmem_limit_bytes=vmem_limit),
    )(*args)

    if T_pad != T:
        out = out[:, :, :T, :]
    return out                                                  # (J, B, T, Dl)


# ----------------------------------------------------------------------------
# EncoderAligner glue (plain JAX: stacking / zero-cost slicing / tuple packing)
# ----------------------------------------------------------------------------
def reshape_encoder_hidden_states(hidden_states, config):
    if isinstance(hidden_states, (tuple, list)):
        hidden_states = jnp.transpose(jnp.stack(hidden_states), (1, 0, 2, 3))
    assert hidden_states.shape[1] == config.num_encoder_layers
    assert hidden_states.shape[3] == config.encoder_hidden_dim
    return hidden_states


def reshape_past_key_values(pkv_jbtd, config):
    """pkv_jbtd already carries the permute([2,0,1,3]) layout: (J, B, T, Dl)."""
    if config.num_transformer_submodules == 2:
        pkv_jbtd = jnp.concatenate([pkv_jbtd, pkv_jbtd], axis=0)
    n = config.num_transformer_submodules * 2
    K = pkv_jbtd.shape[0]
    return tuple(tuple(pkv_jbtd[i + j] for j in range(n))
                 for i in range(0, K, n))


def encoder_aligner_forward(hidden_states, params, config,
                            compute_dtype=jnp.bfloat16):
    hidden_states = reshape_encoder_hidden_states(hidden_states, config)
    pkv_jbtd = weighted_linear_projector(hidden_states, params, config.structure,
                                         compute_dtype=compute_dtype)
    return reshape_past_key_values(pkv_jbtd, config)


# ----------------------------------------------------------------------------
# Pure-JAX f32 reference (for correctness check)
# ----------------------------------------------------------------------------
def reference_projector(x, params, structure):
    hp = jax.lax.Precision.HIGHEST
    y = (jnp.einsum('bltd,jl->btjd', x, params["w1"], precision=hp)
         + params["b1"][None, None, :, None])
    y = jnp.maximum(y, 0.0)
    z = jnp.einsum('btjd,kd->btjk', y, params["w2"], precision=hp) + params["b2"]
    if structure == "MLP":
        z = jnp.maximum(z, 0.0)
        z = jnp.einsum('btjk,mk->btjm', z, params["w3"], precision=hp) + params["b3"]
    return z                                                    # (B, T, J, Dl)


# ----------------------------------------------------------------------------
if __name__ == "__main__":
    config = SimpleNamespace(
        num_encoder_layers=4,
        num_language_layers=2,
        encoder_hidden_dim=32,
        language_hidden_dim=32,
        structure="MLP",
        num_transformer_submodules=1,
        num_attention_heads=4,   # unused by forward (matches PyTorch code path)
    )
    B, T = 2, 8

    key = jax.random.PRNGKey(0)
    kp, kx = jax.random.split(key)
    params = init_params(kp, config)
    x = jax.random.normal(
        kx, (B, config.num_encoder_layers, T, config.encoder_hidden_dim),
        jnp.float32)

    pkv = encoder_aligner_forward(x, params, config)
    for leaf in jax.tree_util.tree_leaves(pkv):
        jax.block_until_ready(leaf)

    # Correctness check vs pure-JAX f32 reference (bf16 MXU operands -> loose tol).
    ref_btjd = reference_projector(x, params, config.structure)
    ref_pkv = reshape_past_key_values(jnp.transpose(ref_btjd, (2, 0, 1, 3)), config)
    for got_layer, ref_layer in zip(pkv, ref_pkv):
        for g, r in zip(got_layer, ref_layer):
            assert g.shape == (B, T, config.language_hidden_dim)
            np.testing.assert_allclose(np.asarray(g), np.asarray(r),
                                       rtol=2e-2, atol=2e-2)

    print("KERNEL_OK")
</pallas_src>

<mosaic_0001>
module attributes {stable_mosaic.version = 11 : i64} {
  func.func @kernel(%arg0: i32, %arg1: i32, %arg2: memref<4x4xf32, #tpu.memory_space<smem>>, %arg3: memref<4xf32, #tpu.memory_space<smem>>, %arg4: memref<1x4x8x32xf32, #tpu.memory_space<vmem>>, %arg5: memref<32x32xbf16, #tpu.memory_space<vmem>>, %arg6: memref<1x32xf32, #tpu.memory_space<vmem>>, %arg7: memref<32x32xbf16, #tpu.memory_space<vmem>>, %arg8: memref<1x32xf32, #tpu.memory_space<vmem>>, %arg9: memref<4x1x8x32xf32, #tpu.memory_space<vmem>>) attributes {dimension_semantics = [#tpu.dimension_semantics<parallel>, #tpu.dimension_semantics<parallel>], iteration_bounds = array<i64: 2, 1>, scalar_prefetch = 0 : i64, scratch_operands = 0 : i64, tpu.core_type = #tpu.core_type<tc>, window_params = [{transform_indices = @transform_0, window_bounds = array<i64: 4, 4>}, {transform_indices = @transform_1, window_bounds = array<i64: 4>}, {transform_indices = @transform_2, window_bounds = array<i64: 1, 4, 8, 32>}, {pipeline_mode = #tpu.pipeline_mode<synchronous>, transform_indices = @transform_3, window_bounds = array<i64: 32, 32>}, {pipeline_mode = #tpu.pipeline_mode<synchronous>, transform_indices = @transform_4, window_bounds = array<i64: 1, 32>}, {pipeline_mode = #tpu.pipeline_mode<synchronous>, transform_indices = @transform_5, window_bounds = array<i64: 32, 32>}, {pipeline_mode = #tpu.pipeline_mode<synchronous>, transform_indices = @transform_6, window_bounds = array<i64: 1, 32>}, {transform_indices = @transform_7, window_bounds = array<i64: 4, 1, 8, 32>}]} {
    %c0 = arith.constant 0 : index
    %c0_0 = arith.constant 0 : index
    %c0_1 = arith.constant 0 : index
    %c0_2 = arith.constant 0 : index
    %0 = vector.load %arg4[%c0, %c0_0, %c0_1, %c0_2] : memref<1x4x8x32xf32, #tpu.memory_space<vmem>>, vector<1x1x8x32xf32>
    %1 = vector.shape_cast %0 : vector<1x1x8x32xf32> to vector<8x32xf32>
    %c0_3 = arith.constant 0 : index
    %c1 = arith.constant 1 : index
    %c0_4 = arith.constant 0 : index
    %c0_5 = arith.constant 0 : index
    %2 = vector.load %arg4[%c0_3, %c1, %c0_4, %c0_5] : memref<1x4x8x32xf32, #tpu.memory_space<vmem>>, vector<1x1x8x32xf32>
    %3 = vector.shape_cast %2 : vector<1x1x8x32xf32> to vector<8x32xf32>
    %c0_6 = arith.constant 0 : index
    %c2 = arith.constant 2 : index
    %c0_7 = arith.constant 0 : index
    %c0_8 = arith.constant 0 : index
    %4 = vector.load %arg4[%c0_6, %c2, %c0_7, %c0_8] : memref<1x4x8x32xf32, #tpu.memory_space<vmem>>, vector<1x1x8x32xf32>
    %5 = vector.shape_cast %4 : vector<1x1x8x32xf32> to vector<8x32xf32>
    %c0_9 = arith.constant 0 : index
    %c3 = arith.constant 3 : index
    %c0_10 = arith.constant 0 : index
    %c0_11 = arith.constant 0 : index
    %6 = vector.load %arg4[%c0_9, %c3, %c0_10, %c0_11] : memref<1x4x8x32xf32, #tpu.memory_space<vmem>>, vector<1x1x8x32xf32>
    %7 = vector.shape_cast %6 : vector<1x1x8x32xf32> to vector<8x32xf32>
    %c0_12 = arith.constant 0 : index
    %c0_13 = arith.constant 0 : index
    %8 = memref.load %arg2[%c0_12, %c0_13] : memref<4x4xf32, #tpu.memory_space<smem>>
    %9 = vector.broadcast %8 : f32 to vector<8x32xf32>
    %10 = arith.mulf %1, %9 : vector<8x32xf32>
    %c0_14 = arith.constant 0 : index
    %c1_15 = arith.constant 1 : index
    %11 = memref.load %arg2[%c0_14, %c1_15] : memref<4x4xf32, #tpu.memory_space<smem>>
    %12 = vector.broadcast %11 : f32 to vector<8x32xf32>
    %13 = arith.mulf %3, %12 : vector<8x32xf32>
    %14 = arith.addf %10, %13 : vector<8x32xf32>
    %c0_16 = arith.constant 0 : index
    %c2_17 = arith.constant 2 : index
    %15 = memref.load %arg2[%c0_16, %c2_17] : memref<4x4xf32, #tpu.memory_space<smem>>
    %16 = vector.broadcast %15 : f32 to vector<8x32xf32>
    %17 = arith.mulf %5, %16 : vector<8x32xf32>
    %18 = arith.addf %14, %17 : vector<8x32xf32>
    %c0_18 = arith.constant 0 : index
    %c3_19 = arith.constant 3 : index
    %19 = memref.load %arg2[%c0_18, %c3_19] : memref<4x4xf32, #tpu.memory_space<smem>>
    %20 = vector.broadcast %19 : f32 to vector<8x32xf32>
    %21 = arith.mulf %7, %20 : vector<8x32xf32>
    %22 = arith.addf %18, %21 : vector<8x32xf32>
    %c0_20 = arith.constant 0 : index
    %23 = memref.load %arg3[%c0_20] : memref<4xf32, #tpu.memory_space<smem>>
    %24 = vector.broadcast %23 : f32 to vector<8x32xf32>
    %25 = arith.addf %22, %24 : vector<8x32xf32>
    %cst = arith.constant 0.000000e+00 : f32
    %26 = vector.broadcast %cst : f32 to vector<8x32xf32>
    %27 = arith.maximumf %25, %26 : vector<8x32xf32>
    %c1_21 = arith.constant 1 : index
    %c0_22 = arith.constant 0 : index
    %28 = memref.load %arg2[%c1_21, %c0_22] : memref<4x4xf32, #tpu.memory_space<smem>>
    %29 = vector.broadcast %28 : f32 to vector<8x32xf32>
    %30 = arith.mulf %1, %29 : vector<8x32xf32>
    %c1_23 = arith.constant 1 : index
    %c1_24 = arith.constant 1 : index
    %31 = memref.load %arg2[%c1_23, %c1_24] : memref<4x4xf32, #tpu.memory_space<smem>>
    %32 = vector.broadcast %31 : f32 to vector<8x32xf32>
    %33 = arith.mulf %3, %32 : vector<8x32xf32>
    %34 = arith.addf %30, %33 : vector<8x32xf32>
    %c1_25 = arith.constant 1 : index
    %c2_26 = arith.constant 2 : index
    %35 = memref.load %arg2[%c1_25, %c2_26] : memref<4x4xf32, #tpu.memory_space<smem>>
    %36 = vector.broadcast %35 : f32 to vector<8x32xf32>
    %37 = arith.mulf %5, %36 : vector<8x32xf32>
    %38 = arith.addf %34, %37 : vector<8x32xf32>
    %c1_27 = arith.constant 1 : index
    %c3_28 = arith.constant 3 : index
    %39 = memref.load %arg2[%c1_27, %c3_28] : memref<4x4xf32, #tpu.memory_space<smem>>
    %40 = vector.broadcast %39 : f32 to vector<8x32xf32>
    %41 = arith.mulf %7, %40 : vector<8x32xf32>
    %42 = arith.addf %38, %41 : vector<8x32xf32>
    %c1_29 = arith.constant 1 : index
    %43 = memref.load %arg3[%c1_29] : memref<4xf32, #tpu.memory_space<smem>>
    %44 = vector.broadcast %43 : f32 to vector<8x32xf32>
    %45 = arith.addf %42, %44 : vector<8x32xf32>
    %cst_30 = arith.constant 0.000000e+00 : f32
    %46 = vector.broadcast %cst_30 : f32 to vector<8x32xf32>
    %47 = arith.maximumf %45, %46 : vector<8x32xf32>
    %c2_31 = arith.constant 2 : index
    %c0_32 = arith.constant 0 : index
    %48 = memref.load %arg2[%c2_31, %c0_32] : memref<4x4xf32, #tpu.memory_space<smem>>
    %49 = vector.broadcast %48 : f32 to vector<8x32xf32>
    %50 = arith.mulf %1, %49 : vector<8x32xf32>
    %c2_33 = arith.constant 2 : index
    %c1_34 = arith.constant 1 : index
    %51 = memref.load %arg2[%c2_33, %c1_34] : memref<4x4xf32, #tpu.memory_space<smem>>
    %52 = vector.broadcast %51 : f32 to vector<8x32xf32>
    %53 = arith.mulf %3, %52 : vector<8x32xf32>
    %54 = arith.addf %50, %53 : vector<8x32xf32>
    %c2_35 = arith.constant 2 : index
    %c2_36 = arith.constant 2 : index
    %55 = memref.load %arg2[%c2_35, %c2_36] : memref<4x4xf32, #tpu.memory_space<smem>>
    %56 = vector.broadcast %55 : f32 to vector<8x32xf32>
    %57 = arith.mulf %5, %56 : vector<8x32xf32>
    %58 = arith.addf %54, %57 : vector<8x32xf32>
    %c2_37 = arith.constant 2 : index
    %c3_38 = arith.constant 3 : index
    %59 = memref.load %arg2[%c2_37, %c3_38] : memref<4x4xf32, #tpu.memory_space<smem>>
    %60 = vector.broadcast %59 : f32 to vector<8x32xf32>
    %61 = arith.mulf %7, %60 : vector<8x32xf32>
    %62 = arith.addf %58, %61 : vector<8x32xf32>
    %c2_39 = arith.constant 2 : index
    %63 = memref.load %arg3[%c2_39] : memref<4xf32, #tpu.memory_space<smem>>
    %64 = vector.broadcast %63 : f32 to vector<8x32xf32>
    %65 = arith.addf %62, %64 : vector<8x32xf32>
    %cst_40 = arith.constant 0.000000e+00 : f32
    %66 = vector.broadcast %cst_40 : f32 to vector<8x32xf32>
    %67 = arith.maximumf %65, %66 : vector<8x32xf32>
    %c3_41 = arith.constant 3 : index
    %c0_42 = arith.constant 0 : index
    %68 = memref.load %arg2[%c3_41, %c0_42] : memref<4x4xf32, #tpu.memory_space<smem>>
    %69 = vector.broadcast %68 : f32 to vector<8x32xf32>
    %70 = arith.mulf %1, %69 : vector<8x32xf32>
    %c3_43 = arith.constant 3 : index
    %c1_44 = arith.constant 1 : index
    %71 = memref.load %arg2[%c3_43, %c1_44] : memref<4x4xf32, #tpu.memory_space<smem>>
    %72 = vector.broadcast %71 : f32 to vector<8x32xf32>
    %73 = arith.mulf %3, %72 : vector<8x32xf32>
    %74 = arith.addf %70, %73 : vector<8x32xf32>
    %c3_45 = arith.constant 3 : index
    %c2_46 = arith.constant 2 : index
    %75 = memref.load %arg2[%c3_45, %c2_46] : memref<4x4xf32, #tpu.memory_space<smem>>
    %76 = vector.broadcast %75 : f32 to vector<8x32xf32>
    %77 = arith.mulf %5, %76 : vector<8x32xf32>
    %78 = arith.addf %74, %77 : vector<8x32xf32>
    %c3_47 = arith.constant 3 : index
    %c3_48 = arith.constant 3 : index
    %79 = memref.load %arg2[%c3_47, %c3_48] : memref<4x4xf32, #tpu.memory_space<smem>>
    %80 = vector.broadcast %79 : f32 to vector<8x32xf32>
    %81 = arith.mulf %7, %80 : vector<8x32xf32>
    %82 = arith.addf %78, %81 : vector<8x32xf32>
    %c3_49 = arith.constant 3 : index
    %83 = memref.load %arg3[%c3_49] : memref<4xf32, #tpu.memory_space<smem>>
    %84 = vector.broadcast %83 : f32 to vector<8x32xf32>
    %85 = arith.addf %82, %84 : vector<8x32xf32>
    %cst_50 = arith.constant 0.000000e+00 : f32
    %86 = vector.broadcast %cst_50 : f32 to vector<8x32xf32>
    %87 = arith.maximumf %85, %86 : vector<8x32xf32>
    %88 = tpu.concatenate %27, %47, %67, %87 in 0 : vector<8x32xf32>, vector<8x32xf32>, vector<8x32xf32>, vector<8x32xf32> -> vector<32x32xf32>
    %89 = arith.truncf %88 : vector<32x32xf32> to vector<32x32xbf16>
    %c0_51 = arith.constant 0 : index
    %c0_52 = arith.constant 0 : index
    %90 = vector.load %arg5[%c0_51, %c0_52] : memref<32x32xbf16, #tpu.memory_space<vmem>>, vector<32x32xbf16>
    %cst_53 = arith.constant dense<0.000000e+00> : vector<32x32xf32>
    %91 = tpu.matmul %89, %90, %cst_53 {dimension_numbers = #tpu.dot_dimension_numbers<[1], [0], [0], [1], [0, 0, 1, 1], [], []>} : vector<32x32xbf16>, vector<32x32xbf16>, vector<32x32xf32> -> vector<32x32xf32>
    %c0_54 = arith.constant 0 : index
    %c0_55 = arith.constant 0 : index
    %92 = vector.load %arg6[%c0_54, %c0_55] : memref<1x32xf32, #tpu.memory_space<vmem>>, vector<1x32xf32>
    %93 = vector.broadcast %92 : vector<1x32xf32> to vector<32x32xf32>
    %94 = arith.addf %91, %93 : vector<32x32xf32>
    %cst_56 = arith.constant 0.000000e+00 : f32
    %95 = vector.broadcast %cst_56 : f32 to vector<32x32xf32>
    %96 = arith.maximumf %94, %95 : vector<32x32xf32>
    %97 = arith.truncf %96 : vector<32x32xf32> to vector<32x32xbf16>
    %c0_57 = arith.constant 0 : index
    %c0_58 = arith.constant 0 : index
    %98 = vector.load %arg7[%c0_57, %c0_58] : memref<32x32xbf16, #tpu.memory_space<vmem>>, vector<32x32xbf16>
    %cst_59 = arith.constant dense<0.000000e+00> : vector<32x32xf32>
    %99 = tpu.matmul %97, %98, %cst_59 {dimension_numbers = #tpu.dot_dimension_numbers<[1], [0], [0], [1], [0, 0, 1, 1], [], []>} : vector<32x32xbf16>, vector<32x32xbf16>, vector<32x32xf32> -> vector<32x32xf32>
    %c0_60 = arith.constant 0 : index
    %c0_61 = arith.constant 0 : index
    %100 = vector.load %arg8[%c0_60, %c0_61] : memref<1x32xf32, #tpu.memory_space<vmem>>, vector<1x32xf32>
    %101 = vector.broadcast %100 : vector<1x32xf32> to vector<32x32xf32>
    %102 = arith.addf %99, %101 : vector<32x32xf32>
    %103 = vector.extract_strided_slice %102 {offsets = [0, 0], sizes = [8, 32], strides = [1, 1]} : vector<32x32xf32> to vector<8x32xf32>
    %c0_62 = arith.constant 0 : index
    %c0_63 = arith.constant 0 : index
    %c0_64 = arith.constant 0 : index
    %c0_65 = arith.constant 0 : index
    %104 = vector.load %arg9[%c0_62, %c0_63, %c0_64, %c0_65] : memref<4x1x8x32xf32, #tpu.memory_space<vmem>>, vector<1x1x8x32xf32>
    %105 = vector.shape_cast %104 : vector<1x1x8x32xf32> to vector<8x32xf32>
    %106 = vector.shape_cast %103 : vector<8x32xf32> to vector<1x1x8x32xf32>
    tpu.vector_store %arg9[%c0_62, %c0_63, %c0_64, %c0_65], %106 {strides = array<i32>} : memref<4x1x8x32xf32, #tpu.memory_space<vmem>>, vector<1x1x8x32xf32>,
    %107 = vector.extract_strided_slice %102 {offsets = [8, 0], sizes = [8, 32], strides = [1, 1]} : vector<32x32xf32> to vector<8x32xf32>
    %c1_66 = arith.constant 1 : index
    %c0_67 = arith.constant 0 : index
    %c0_68 = arith.constant 0 : index
    %c0_69 = arith.constant 0 : index
    %108 = vector.load %arg9[%c1_66, %c0_67, %c0_68, %c0_69] : memref<4x1x8x32xf32, #tpu.memory_space<vmem>>, vector<1x1x8x32xf32>
    %109 = vector.shape_cast %108 : vector<1x1x8x32xf32> to vector<8x32xf32>
    %110 = vector.shape_cast %107 : vector<8x32xf32> to vector<1x1x8x32xf32>
    tpu.vector_store %arg9[%c1_66, %c0_67, %c0_68, %c0_69], %110 {strides = array<i32>} : memref<4x1x8x32xf32, #tpu.memory_space<vmem>>, vector<1x1x8x32xf32>,
    %111 = vector.extract_strided_slice %102 {offsets = [16, 0], sizes = [8, 32], strides = [1, 1]} : vector<32x32xf32> to vector<8x32xf32>
    %c2_70 = arith.constant 2 : index
    %c0_71 = arith.constant 0 : index
    %c0_72 = arith.constant 0 : index
    %c0_73 = arith.constant 0 : index
    %112 = vector.load %arg9[%c2_70, %c0_71, %c0_72, %c0_73] : memref<4x1x8x32xf32, #tpu.memory_space<vmem>>, vector<1x1x8x32xf32>
    %113 = vector.shape_cast %112 : vector<1x1x8x32xf32> to vector<8x32xf32>
    %114 = vector.shape_cast %111 : vector<8x32xf32> to vector<1x1x8x32xf32>
    tpu.vector_store %arg9[%c2_70, %c0_71, %c0_72, %c0_73], %114 {strides = array<i32>} : memref<4x1x8x32xf32, #tpu.memory_space<vmem>>, vector<1x1x8x32xf32>,
    %115 = vector.extract_strided_slice %102 {offsets = [24, 0], sizes = [8, 32], strides = [1, 1]} : vector<32x32xf32> to vector<8x32xf32>
    %c3_74 = arith.constant 3 : index
    %c0_75 = arith.constant 0 : index
    %c0_76 = arith.constant 0 : index
    %c0_77 = arith.constant 0 : index
    %116 = vector.load %arg9[%c3_74, %c0_75, %c0_76, %c0_77] : memref<4x1x8x32xf32, #tpu.memory_space<vmem>>, vector<1x1x8x32xf32>
    %117 = vector.shape_cast %116 : vector<1x1x8x32xf32> to vector<8x32xf32>
    %118 = vector.shape_cast %115 : vector<8x32xf32> to vector<1x1x8x32xf32>
    tpu.vector_store %arg9[%c3_74, %c0_75, %c0_76, %c0_77], %118 {strides = array<i32>} : memref<4x1x8x32xf32, #tpu.memory_space<vmem>>, vector<1x1x8x32xf32>,
    return
  }
  func.func @transform_0(%arg0: i32, %arg1: i32) -> (i32, i32) {
    %c0_i32 = arith.constant 0 : i32
    %c0_i32_0 = arith.constant 0 : i32
    %c0_i32_1 = arith.constant 0 : i32
    return %c0_i32, %c0_i32_0 : i32, i32
  }
  func.func @transform_1(%arg0: i32, %arg1: i32) -> i32 {
    %c0_i32 = arith.constant 0 : i32
    %c0_i32_0 = arith.constant 0 : i32
    return %c0_i32 : i32
  }
  func.func @transform_2(%arg0: i32, %arg1: i32) -> (i32, i32, i32, i32) {
    %c0_i32 = arith.constant 0 : i32
    %c0_i32_0 = arith.constant 0 : i32
    %c0_i32_1 = arith.constant 0 : i32
    return %arg0, %c0_i32, %arg1, %c0_i32_0 : i32, i32, i32, i32
  }
  func.func @transform_3(%arg0: i32, %arg1: i32) -> (i32, i32) {
    %c0_i32 = arith.constant 0 : i32
    %c0_i32_0 = arith.constant 0 : i32
    %c0_i32_1 = arith.constant 0 : i32
    return %c0_i32, %c0_i32_0 : i32, i32
  }
  func.func @transform_4(%arg0: i32, %arg1: i32) -> (i32, i32) {
    %c0_i32 = arith.constant 0 : i32
    %c0_i32_0 = arith.constant 0 : i32
    %c0_i32_1 = arith.constant 0 : i32
    return %c0_i32, %c0_i32_0 : i32, i32
  }
  func.func @transform_5(%arg0: i32, %arg1: i32) -> (i32, i32) {
    %c0_i32 = arith.constant 0 : i32
    %c0_i32_0 = arith.constant 0 : i32
    %c0_i32_1 = arith.constant 0 : i32
    return %c0_i32, %c0_i32_0 : i32, i32
  }
  func.func @transform_6(%arg0: i32, %arg1: i32) -> (i32, i32) {
    %c0_i32 = arith.constant 0 : i32
    %c0_i32_0 = arith.constant 0 : i32
    %c0_i32_1 = arith.constant 0 : i32
    return %c0_i32, %c0_i32_0 : i32, i32
  }
  func.func @transform_7(%arg0: i32, %arg1: i32) -> (i32, i32, i32, i32) {
    %c0_i32 = arith.constant 0 : i32
    %c0_i32_0 = arith.constant 0 : i32
    %c0_i32_1 = arith.constant 0 : i32
    return %c0_i32, %arg0, %arg1, %c0_i32_0 : i32, i32, i32, i32
  }
}

</mosaic_0001>

<bundles_post_ra>
// kernel: tpu_custom_call.1
= control target key start
LH: loop header
LB: loop body
LE: loop exit
PB: predicated region body
PF: predicated region fallthrough
CT: control target
= control target key end

     0   :  { %s1480_s0 = inlined_call_operand.hbm [shape: f32[4,4], index: 0, kind: input, shape index: {}]   ;;  %s1481_s1 = inlined_call_operand.vmem [shape: f32[4], index: 1, kind: input, shape index: {}]   ;;  %s1482_s2 = inlined_call_operand.hbm [shape: f32[2,4,8,32], index: 2, kind: input, shape index: {}]   ;;  %s1483_s3 = inlined_call_operand.hbm [shape: bf16[32,32], index: 3, kind: input, shape index: {}]   ;;  %s1484_s4 = inlined_call_operand.vmem [shape: f32[1,32], index: 4, kind: input, shape index: {}]   ;;  %s1485_s5 = inlined_call_operand.vmem [shape: bf16[32,32], index: 5, kind: input, shape index: {}]   ;;  %s1486_s6 = inlined_call_operand.vmem [shape: f32[1,32], index: 6, kind: input, shape index: {}]   ;;  %s1487_s7 = inlined_call_operand.hbm [shape: f32[4,2,8,32], index: 7, kind: output, shape index: {}]  }
   0x1   :  { %1494 = sst [smem:[#allocation18_spill]] %s1480_s0 }
   0x2   :  { %1495 = sst [smem:[#allocation19_spill]] %s1481_s1 }
   0x3   :  { %1496 = sst [smem:[#allocation20_spill]] %s1482_s2 }
   0x4   :  { %1497 = sst [smem:[#allocation21_spill]] %s1483_s3 }
   0x5   :  { %12 = vsyncpa [#allocation5], 0 }
   0x6   :  { %13 = vsyncpa [#allocation6], 0 }
   0x7   :  { %14 = vsyncpa [#allocation3], 0 }
   0x8   :  { %16 = vsyncpa [#allocation3 + $0x1], 0 }
   0x9   :  { %17 = vsyncpa [#allocation10], 0 }
   0xa   :  { %18 = vsyncpa [#allocation4], 0 }
   0xb   :  { %20 = vsyncpa [#allocation4 + $0x1], 0  ;;  %s1159_s24 = smov 0   ;;  %s1161_s25 = smov 0  }
   0xc   :  { %s1163_s26 = smov 0   ;;  %s1165_s27 = smov 0  }
   0xd   :  { %s1167_s28 = smov 0   ;;  %s1169_s29 = smov 0  }
   0xe LB: > { %s742_s30 = sadd.s32 4294967295, %s1105_s29   ;;  %s743_s8 = sadd.s32 4294967294, %s1105_s29   ;;  %s1105_s29 = sphi %s1169_s29, %s26_s29   ;;  %s1101_s28 = sphi %s1167_s28, %s1522_s28   ;;  %s1097_s27 = sphi %s1165_s27, %s1521_s27   ;;  %s1093_s26 = sphi %s1163_s26, %s1520_s26   ;;  %s1089_s25 = sphi %s1161_s25, %s1519_s25   ;;  %s1085_s24 = sphi %s1159_s24, %s1518_s24  }
   0xf   : > { %p102_p0 = scmp.ne.s32.totalorder %s1089_s25, %s1085_s24  ;;  %p1193_p1 = scmp.eq.s32.totalorder %s742_s30, 0 }
  0x10   : > { %p1197_p2 = scmp.eq.s32.totalorder %s742_s30, 1  ;;  %p218_p3 = scmp.eq.s32.totalorder %s743_s8, 1 }
  0x11   : > { %s1498_s9 = scalar_select %p1193_p1, 1, 0 }
  0x12   : > { %p1203_p4 = por %p1193_p1, %p102_p0  ;;  %p744_p5 = scmp.ge.s32.totalorder %s1105_s29, 1 }
  0x13   : > { %p1208_p6 = por %p218_p3, %p102_p0  ;;  %p225_p7 = scmp.lt.s32.totalorder %s1105_s29, 3 }
  0x14   : > { %s1500_s11 = scalar_select %p1203_p4, 1, 0 }
  0x15   : > { %s1501_s12 = scalar_select %p1208_p6, 1, 0 }
  0x16   : > { %p1213_p8 = pnand %p744_p5, %p225_p7  ;;  %s1503_s1 = sld [smem:[#allocation19_spill]] }
  0x17   : > { %s1107_s18 = smov [#allocation9]   ;;  %s1505_s0 = sld [smem:[#allocation18_spill]] }
  0x18   : > { %p837_p10 = pneg %p1213_p8  ;;  %s257_s19 = sshll.u32 %s1107_s18, 4  ;;  %s1229_s19 = int_to_ptr.vmem [resolvable:$true] %s257_s19 }
  0x1a   : > { %p1225_p11 = pnand %p837_p10, %p1193_p1 }
  0x1c   : > { %s247_s16 = sshll.u32 %s1503_s1, 4  ;;  %p927_p13 = pneg %p1225_p11  ;;  %s248_s16 = int_to_ptr.vmem [resolvable:$true] %s247_s16 }
  0x1d   : > { %s925_s22 = scalar_lea.hbm %s1505_s0, 64 }
  0x1e   : > { %p926_p12 = scmp.ne.s32.totalorder %s1505_s0, %s925_s22  ;;  %p932_p5 = scmp.lt.u32.totalorder %s925_s22, %s1505_s0 }
  0x20   : > { %p928_p0 = pnand %p927_p13, %p926_p12 }
  0x22   : > { %p929_p3 = pneg %p928_p0 }
  0x24   : > { %p934_p7 = pnand %p932_p5, %p929_p3 }
  0x26   : > { %937 = shalt.err (!%p934_p7)
}
  0x27   : > { %s1108_s15 = smov [#allocation2]   ;;  %s938_s21 = scalar_lea.vmem %s248_s16, 16 }
  0x28   : > { %840 = dma.hbm_to_smem (!%p1225_p11), %s1505_s0, 64, %s1108_s15, [#allocation5]  }
  0x29   : > { %p939_p10 = scmp.ne.s32.totalorder %s248_s16, %s938_s21  ;;  %p946_p9 = scmp.lt.s32.totalorder %s248_s16, %s248_s16 }
  0x2a   : > { %p947_p6 = scmp.lt.s32.totalorder %s938_s21, %s938_s21 }
  0x2b   : > { %p941_p12 = pnand %p939_p10, %p927_p13 }
  0x2c   : > { %p948_p4 = por %p947_p6, %p946_p9 }
  0x2d   : > { %p942_p0 = pneg %p941_p12 }
  0x2f   : > { %p949_p1 = pnand %p948_p4, %p942_p0 }
  0x31   : > { %952 = shalt.err (!%p949_p1)
}
  0x32   : > { %s1109_s22 = smov [#allocation7]   ;;  %s1506_s3 = sld [smem:[#allocation21_spill]] }
  0x33   : > { %843 = dma.vmem_to_smem (!%p1225_p11), %s248_s16, 16, %s1109_s22, [#allocation6]  }
  0x38   : > { %s953_s8 = scalar_lea.hbm %s1506_s3, 256 }
  0x39   : > { %p954_p3 = scmp.ne.s32.totalorder %s1506_s3, %s953_s8  ;;  %p960_p1 = scmp.lt.u32.totalorder %s953_s8, %s1506_s3 }
  0x3b   : > { %p956_p5 = pnand %p954_p3, %p927_p13 }
  0x3d   : > { %p957_p7 = pneg %p956_p5 }
  0x3f   : > { %p962_p4 = pnand %p960_p1, %p957_p7 }
  0x41   : > { %965 = shalt.err (!%p962_p4)
}
  0x42   : > { %s966_s16 = scalar_lea.vmem %s1229_s19, 256  ;;  %p974_p12 = scmp.lt.s32.totalorder %s1229_s19, %s1229_s19 }
  0x43   : > { %p967_p6 = scmp.ne.s32.totalorder %s1229_s19, %s966_s16  ;;  %p975_p0 = scmp.lt.s32.totalorder %s966_s16, %s966_s16 }
  0x45   : > { %p969_p9 = pnand %p967_p6, %p927_p13  ;;  %p976_p3 = por %p975_p0, %p974_p12 }
  0x47   : > { %p970_p10 = pneg %p969_p9 }
  0x49   : > { %p977_p5 = pnand %p976_p3, %p970_p10 }
  0x4b   : > { %980 = shalt.err (!%p977_p5)
}
  0x4c   : > { %s1110_s21 = smov 64   ;;  %s1111_s22 = smov 4  }
  0x4d   : > { %846 = dma.hbm_to_vmem [thread:$0]  (!%p1225_p11), %s1506_s3, 256, %s1229_s19, [#allocation10], %s1110_s21, %s1110_s21, %s1111_s22  }
  0x4e   : > { %s89_s8 = sadd.s32 1, %s1093_s26  ;;  %s38_s14 = sadd.s32 1, %s1101_s28 }
  0x4f   : > { %p96_p13 = scmp.ne.s32.totalorder %s1093_s26, %s1089_s25  ;;  %p40_p7 = scmp.ge.s32.totalorder %s38_s14, 2 }
  0x50   : > { %p97_p1 = scmp.eq.s32.totalorder %s1105_s29, 0  ;;  %p858_p6 = scmp.lt.s32.totalorder %s1105_s29, 2 }
  0x51   : > { %p1287_p4 = por %p1197_p2, %p96_p13  ;;  %s1524_s14 = smov (%p40_p7, %s38_s14), 0 }
  0x52   : > { %1508 = sst [smem:[#allocation17_spill]] %s1524_s14  ;;  %p98_p9 = por %p97_p1, %p96_p13 }
  0x53   : > { %s1507_s15 = scalar_select %p1287_p4, 1, 0 }
  0x54   : > { %s280_s17 = sand.u32 1, %s1093_s26   ;;  %s84_s18 = ssub.s32 %s1101_s28, %s1524_s14 }
  0x55   : > { %p87_p10 = scmp.eq.s32.totalorder %s84_s18, 0  ;;  %s749_s19 = sshll.u32 %s280_s17, 5 }
  0x56   : > { %s796_s20 = sshll.u32 %s1101_s28, 9  ;;  %s1509_s2 = sld [smem:[#allocation20_spill]] }
  0x57   : > { %s1299_s16 = scalar_select %p87_p10, %s1093_s26, %s89_s8  }
  0x58   : > { %s284_s23 = scalar_lea.vmem [#allocation8], %s749_s19  ;;  %p1310_p2 = pnand %p858_p6, %p98_p9 }
  0x59   : > { %s292_s30 = sshll.u32 %s284_s23, 4  ;;  %s1314_s8 = scalar_lea.sflag [#allocation3], %s280_s17  ;;  %s1306_s30 = int_to_ptr.vmem [resolvable:$true] %s292_s30 }
  0x5a   : > { %p983_p12 = pneg %p1310_p2 }
  0x5c   : > { %s1304_s10 = scalar_lea.hbm %s1509_s2, %s796_s20  ;;  %s986_s22 = scalar_lea.hbm %s1509_s2, 1024 }
  0x5d   : > { %s981_s21 = scalar_lea.hbm %s1304_s10, 512  ;;  %p987_p5 = scmp.lt.u32.totalorder %s1304_s10, %s1509_s2 }
  0x5e   : > { %p982_p11 = scmp.ne.s32.totalorder %s1304_s10, %s981_s21  ;;  %p988_p13 = scmp.lt.u32.totalorder %s986_s22, %s981_s21 }
  0x5f   : > { %p990_p1 = scmp.lt.u32.totalorder %s981_s21, %s1304_s10 }
  0x60   : > { %p984_p0 = pnand %p983_p12, %p982_p11  ;;  %p989_p7 = por %p988_p13, %p987_p5 }
  0x62   : > { %p985_p3 = pneg %p984_p0  ;;  %p991_p6 = por %p990_p1, %p989_p7 }
  0x64   : > { %p992_p9 = pnand %p991_p6, %p985_p3 }
  0x66   : > { %995 = shalt.err (!%p992_p9)
}
  0x67   : > { %s996_s17 = scalar_lea.vmem %s1306_s30, 512  ;;  %s1112_s19 = smov [#allocation8]  }
  0x68   : > { %p997_p10 = scmp.ne.s32.totalorder %s1306_s30, %s996_s17  ;;  %s1001_s20 = sshll.u32 %s1112_s19, 4  ;;  %s1002_s20 = int_to_ptr.vmem [resolvable:$false] %s1001_s20 }
  0x69   : > { %s1003_s0 = scalar_lea.vmem %s1002_s20, 1024  ;;  %p1004_p4 = scmp.lt.s32.totalorder %s1306_s30, %s1002_s20 }
  0x6a   : > { %p999_p11 = pnand %p997_p10, %p983_p12  ;;  %p1005_p5 = scmp.lt.s32.totalorder %s1003_s0, %s996_s17 }
  0x6c   : > { %p1000_p0 = pneg %p999_p11  ;;  %p1006_p13 = por %p1005_p5, %p1004_p4 }
  0x6e   : > { %p1007_p7 = pnand %p1006_p13, %p1000_p0 }
  0x70   : > { %1010 = shalt.err (!%p1007_p7)
}
  0x71   : > { %s1113_s21 = smov 128   ;;  %s1114_s22 = smov 8  }
  0x72   : > { %850 = dma.hbm_to_vmem [thread:$0]  (!%p1310_p2), %s1304_s10, 512, %s1306_s30, %s1314_s8, %s1113_s21, %s1113_s21, %s1114_s22  }
  0x73   : > { %304 = sbr.rel (%p1213_p8) target bundleno = 617 (0x269), region = 48  ;;  %p1511_p12 = scmp.ne.s32.totalorder (!%p1213_p8), %s1498_s9, 0 }
  0x7a   : > { %1064 = dma.done.wait (%p1511_p12), [#allocation5], 64  }
  0x7b   : > { %1066 = vsyncadd (%p1511_p12), [#allocation5], 4294967232 }
  0x7c   : > { %1068 = dma.done.wait (%p1511_p12), [#allocation6], 16  }
  0x7d   : > { %1070 = vsyncadd (%p1511_p12), [#allocation6], 4294967280  ;;  %s1353_s23 = sand.u32 1, %s1089_s25   ;;  %p1512_p8 = scmp.ne.s32.totalorder %s1500_s11, 0 }
  0x7e   : > { %s1492_s13 = sshll.u32 %s1353_s23, 5  ;;  %s315_s10 = scalar_lea.sflag [#allocation3], %s1353_s23 }
  0x7f   : > { %s318_s30 = scalar_lea.vmem [#allocation8], %s1492_s13 }
  0x80   : > { %1072 = dma.done.wait (%p1512_p8), %s315_s10, 512  }
  0x81   : > { %1074 = vsyncadd (%p1512_p8), %s315_s10, 4294966784 }
  0x82   : > { %1076 = dma.done.wait (%p1511_p12), [#allocation10], 256  }
  0x83   : > { %1078 = vsyncadd (%p1511_p12), [#allocation10], 4294967040 }
  0x84   : > { %327 = sfence }
  0x85   : > { %v921_v0 = vld [vmem:[#allocation9] sm:$0xff]   ;;  %v922_v1 = vld [vmem:[#allocation9 + $0x8] sm:$0xff]   ;;  %s362_s18 = sld [smem:[#allocation2]]  ;;  %s761_s8 = sld [smem:[#allocation2 + $0x1]]  ;;  %v759_v4 = vld [vmem:[%s318_s30 + $0x10] sm:$0xff]  ;;  %vm463_vm0 = vcmask 261120  }
  0x86   : > { %805 = vmatprep.subr.bf16.mxu0 %v921_v0  ;;  %s762_s17 = sld [smem:[#allocation2 + $0x2]]  ;;  %v355_v2 = vld [vmem:[%s318_s30] sm:$0xff]  ;;  %s763_s19 = sld [smem:[#allocation2 + $0x3]]  ;;  %v758_v3 = vld [vmem:[%s318_s30 + $0x8] sm:$0xff]  ;;  %v760_v5 = vld [vmem:[%s318_s30 + $0x18] sm:$0xff] }
  0x87   : > { %806 = vmatpush3.bf16.msra.mxu0 %v921_v0  ;;  %s1367_s20 = sld [smem:[#allocation7]]  ;;  %s765_s0 = sld [smem:[#allocation2 + $0x81]]  ;;  %v923_v0 = vld [vmem:[%s1485_s5] sm:$0xff]  }
  0x88   : > { %807 = vmatprep.subr.bf16.mxu0 %v922_v1  ;;  %s764_s11 = sld [smem:[#allocation2 + $0x80]]  ;;  %s766_s21 = sld [smem:[#allocation2 + $0x82]]  ;;  %813 = vmatprep.subr.bf16.mxu1 %v923_v0 }
  0x89   : > { %s1369_s9 = sld [smem:[#allocation2 + $0x83]]  ;;  %s1371_s22 = sld [smem:[#allocation7 + $0x1]]  ;;  %814 = vmatpush3.bf16.msra.mxu1 %v923_v0 }
  0x8a   : > { %s1373_s10 = sld [smem:[#allocation2 + $0x100]]  ;;  %s1375_s13 = sld [smem:[#allocation2 + $0x101]] }
  0x8b   : > { %808 = vmatpush3.bf16.msra.mxu0 %v922_v1  ;;  %v363_v6 = vstv %s362_s18  ;;  %s1377_s1 = sld [smem:[#allocation2 + $0x102]]  ;;  %v366_v8 = vstv %s761_s8  ;;  %s1379_s2 = sld [smem:[#allocation2 + $0x103]]  ;;  %v924_v1 = vld [vmem:[%s1485_s5 + $0x8] sm:$0xff]  }
  0x8c   : > { %v364_v7 = vmul.f32 %v363_v6, %v355_v2  ;;  %v370_v9 = vstv %s762_s17  ;;  %v367_v10 = vmul.f32 %v758_v3, %v366_v8  ;;  %v374_v12 = vstv %s763_s19  ;;  %s1381_s3 = sld [smem:[#allocation2 + $0x180]]  ;;  %s1383_s14 = sld [smem:[#allocation2 + $0x181]]  ;;  %815 = vmatprep.subr.bf16.mxu1 %v924_v1 }
  0x8d   : > { %v371_v11 = vmul.f32 %v759_v4, %v370_v9  ;;  %v375_v13 = vmul.f32 %v760_v5, %v374_v12  ;;  %v385_v15 = vstv %s765_s0  ;;  %s1385_s30 = sld [smem:[#allocation2 + $0x182]]  ;;  %s1387_s18 = sld [smem:[#allocation2 + $0x183]]  ;;  %v378_v20 = vstv %s1367_s20  ;;  %816 = vmatpush3.bf16.msra.mxu1 %v924_v1 }
  0x8e   : > { %v382_v14 = vstv %s764_s11  ;;  %v368_v16 = vadd.f32 %v367_v10, %v364_v7  ;;  %v386_v18 = vmul.f32 %v758_v3, %v385_v15  ;;  %v389_v19 = vstv %s766_s21  ;;  %s1392_s8 = sld [smem:[#allocation7 + $0x2]]  ;;  %s778_s17 = sld [smem:[#allocation7 + $0x3]] }
  0x8f   : > { %v383_v17 = vmul.f32 %v382_v14, %v355_v2  ;;  %v390_v21 = vmul.f32 %v759_v4, %v389_v19  ;;  %v393_v22 = vstv %s1369_s9  ;;  %v397_v28 = vstv %s1371_s22  ;;  %s1513_s0 = sshll.u32 %s1353_s23, 5  ;;  %s793_s22 = sshll.u32 %s1097_s27, 7 }
  0x90   : > { %v401_v23 = vstv %s1373_s10  ;;  %v372_v24 = vadd.f32 %v371_v11, %v368_v16  ;;  %v394_v26 = vmul.f32 %v760_v5, %v393_v22  ;;  %v404_v29 = vstv %s1375_s13  ;;  %s353_s21 = scalar_lea.vmem [#allocation11], %s1513_s0  ;;  %s611_s27 = scalar_lea.sflag [#allocation4], %s1353_s23 }
  0x91   : > { %v387_v25 = vadd.f32 %v386_v18, %v383_v17  ;;  %v402_v27 = vmul.f32 %v401_v23, %v355_v2  ;;  %v408_v30 = vstv %s1377_s1  ;;  %v412_v31 = vstv %s1379_s2  ;;  %v784_v17 = vld [vmem:[%s1486_s6] ss:$0 sm:$0xff]  ;;  %s624_s9 = sshll.u32 %s353_s21, 4  ;;  %p1514_p2 = scmp.ne.s32.totalorder %s1507_s15, 0  ;;  %s1422_s9 = int_to_ptr.vmem [resolvable:$true] %s624_s9 }
  0x92   : > { %v376_v32 = vadd.f32 %v375_v13, %v372_v24  ;;  %v405_v34 = vmul.f32 %v758_v3, %v404_v29  ;;  %v409_v35 = vmul.f32 %v759_v4, %v408_v30  ;;  %v413_v36 = vmul.f32 %v760_v5, %v412_v31 }
  0x93   : > { %v391_v33 = vadd.f32 %v390_v21, %v387_v25  ;;  %v420_v37 = vstv %s1381_s3  ;;  %v423_v38 = vstv %s1383_s14  ;;  %v427_v39 = vstv %s1385_s30 }
  0x94   : > { %v379_v40 = vadd.f32 %v378_v20, %v376_v32  ;;  %v406_v42 = vadd.f32 %v405_v34, %v402_v27  ;;  %v421_v43 = vmul.f32 %v420_v37, %v355_v2  ;;  %v424_v44 = vmul.f32 %v758_v3, %v423_v38  ;;  %v779_v2 = vld [vmem:[%s1484_s4] ss:$0 sm:$0xff] }
  0x95   : > { %v395_v41 = vadd.f32 %v394_v26, %v391_v33  ;;  %v428_v45 = vmul.f32 %v759_v4, %v427_v39  ;;  %v431_v46 = vstv %s1387_s18  ;;  %v416_v50 = vstv %s1392_s8  ;;  %s1428_s18 = scalar_lea.hbm %s1487_s7, %s793_s22  ;;  %s1011_s8 = scalar_lea.vmem %s1422_s9, 512 }
  0x96   : > { %v380_v47 = vmax.f32 %v379_v40, 0.0  ;;  %v410_v49 = vadd.f32 %v409_v35, %v406_v42  ;;  %v425_v51 = vadd.f32 %v424_v44, %v421_v43  ;;  %v432_v52 = vmul.f32 %v760_v5, %v431_v46  ;;  %p1012_p4 = scmp.ne.s32.totalorder %s1422_s9, %s1011_s8 }
  0x97   : > { %v398_v48 = vadd.f32 %v397_v28, %v395_v41  ;;  %v435_v58 = vstv %s778_s17  ;;  %s1115_s17 = smov [#allocation11]  }
  0x98   : > { %v414_v54 = vadd.f32 %v413_v36, %v410_v49  ;;  %v429_v55 = vadd.f32 %v428_v45, %v425_v51  ;;  %p1013_p3 = pnand %p1012_p4, %p1514_p2  ;;  %s1015_s1 = sshll.u32 %s1115_s17, 4  ;;  %s1016_s1 = int_to_ptr.vmem [resolvable:$false] %s1015_s1 }
  0x99   : > { %v399_v53 = vmax.f32 %v398_v48, 0.0  ;;  %s1017_s2 = scalar_lea.vmem %s1016_s1, 1024  ;;  %p1018_p6 = scmp.lt.s32.totalorder %s1422_s9, %s1016_s1 }
  0x9a   : > { %v417_v57 = vadd.f32 %v416_v50, %v414_v54  ;;  %v433_v59 = vadd.f32 %v432_v52, %v429_v55  ;;  %p1014_p1 = pneg %p1013_p3  ;;  %p1019_p9 = scmp.lt.s32.totalorder %s1017_s2, %s1011_s8 }
  0x9b   : > { %v438_v56 = vpack.c.bf16 %v399_v53, %v380_v47 }
  0x9c   : > { %v418_v60 = vmax.f32 %v417_v57, 0.0  ;;  %v436_v61 = vadd.f32 %v435_v58, %v433_v59  ;;  %p1020_p10 = por %p1019_p9, %p1018_p6 }
  0x9d   : > { %809 = vmatprep.mubr.msk.bf16.mxu0 %vm463_vm0, %v438_v56 }
  0x9e   : > { %v437_v62 = vmax.f32 %v436_v61, 0.0  ;;  %p1021_p11 = pnand %p1020_p10, %p1014_p1 }
  0xa0   : > { %v439_v63 = vpack.c.bf16 %v437_v62, %v418_v60 }
  0xa2   : > { %810 = vmatmul.mubr.msk.bf16.vlgmr.msra.gmra.mrb[0].mxu0 %vm463_vm0, %v439_v63 }
 0x175   : > { %v811_v3 = vpop.f32.mrb[0].mxu0 }
 0x176   : > { %v513_v4 = vadd.f32 %v811_v3, %v779_v2  ;;  %v504_v5 = vpop.f32.mrb[1].mxu0 }
 0x177   : > { %v505_v6 = vadd.f32 %v779_v2, %v504_v5  ;;  %v812_v7 = vpop.f32.mrb[2].mxu0 }
 0x178   : > { %v516_v8 = vadd.f32 %v812_v7, %v779_v2  ;;  %v507_v9 = vpop.f32.mrb[3].mxu0  ;;  %v521_v11 = vmax.f32 %v513_v4, 0.0 }
 0x179   : > { %v508_v10 = vadd.f32 %v779_v2, %v507_v9  ;;  %v519_v13 = vmax.f32 %v505_v6, 0.0 }
 0x17a   : > { %v522_v12 = vmax.f32 %v516_v8, 0.0 }
 0x17b   : > { %v520_v14 = vmax.f32 %v508_v10, 0.0 }
 0x17c   : > { %v524_v15 = vpack.c.bf16 %v522_v12, %v521_v11 }
 0x17d   : > { %v523_v16 = vpack.c.bf16 %v520_v14, %v519_v13 }
 0x17f   : > { %817 = vmatprep.mubr.msk.bf16.mxu1 %vm463_vm0, %v523_v16 }
 0x180   : > { %818 = vmatmul.mubr.msk.bf16.vlgmr.msra.gmra.mrb[0].mxu1 %vm463_vm0, %v524_v15 }
 0x253   : > { %v819_v18 = vpop.f32.mrb[0].mxu1 }
 0x254   : > { %v597_v19 = vadd.f32 %v819_v18, %v784_v17  ;;  %v588_v20 = vpop.f32.mrb[1].mxu1 }
 0x255   : > { %v589_v21 = vadd.f32 %v784_v17, %v588_v20  ;;  %v820_v22 = vpop.f32.mrb[2].mxu1 }
 0x256   : > { %790 = vst.msk [vmem:[%s353_s21 + $0x10] sm:$0xff] %vm463_vm0, %v597_v19  ;;  %v600_v23 = vadd.f32 %v820_v22, %v784_v17  ;;  %v591_v24 = vpop.f32.mrb[3].mxu1 }
 0x257   : > { %603 = vst.msk [vmem:[%s353_s21] sm:$0xff] %vm463_vm0, %v589_v21  ;;  %v592_v25 = vadd.f32 %v784_v17, %v591_v24 }
 0x258   : > { %791 = vst.msk [vmem:[%s353_s21 + $0x18] sm:$0xff] %vm463_vm0, %v600_v23 }
 0x259   : > { %789 = vst.msk [vmem:[%s353_s21 + $0x8] sm:$0xff] %vm463_vm0, %v592_v25 }
 0x25a   : > { %1024 = shalt.err (!%p1021_p11)
}
 0x25b   : > { %s1025_s3 = scalar_lea.hbm %s1428_s18, 512  ;;  %s1029_s19 = scalar_lea.hbm %s1487_s7, 1024 }
 0x25c   : > { %p1026_p0 = scmp.ne.s32.totalorder %s1428_s18, %s1025_s3  ;;  %p1030_p7 = scmp.lt.u32.totalorder %s1428_s18, %s1487_s7 }
 0x25d   : > { %p1031_p12 = scmp.lt.u32.totalorder %s1029_s19, %s1025_s3  ;;  %p1033_p4 = scmp.lt.u32.totalorder %s1025_s3, %s1428_s18 }
 0x25e   : > { %p1027_p5 = pnand %p1026_p0, %p1514_p2 }
 0x25f   : > { %p1032_p8 = por %p1031_p12, %p1030_p7 }
 0x260   : > { %p1028_p13 = pneg %p1027_p5 }
 0x261   : > { %p1034_p3 = por %p1033_p4, %p1032_p8 }
 0x263   : > { %p1035_p1 = pnand %p1034_p3, %p1028_p13 }
 0x265   : > { %1038 = shalt.err (!%p1035_p1)
}
 0x266   : > { %s1116_s0 = smov 128   ;;  %s1117_s21 = smov 256  }
 0x267   : > { %s1118_s22 = smov 8  }
 0x268   : > { %835 = dma.vmem_to_hbm [thread:$0]  (%p1514_p2), %s1422_s9, 512, %s1428_s18, %s611_s27, %s1116_s0, %s1117_s21, %s1118_s22  }
 0x269 PF: > { %s639_s10 = sand.u32 1, %s1085_s24   ;;  %p1515_p6 = scmp.ne.s32.totalorder %s1501_s12, 0 }
 0x26a   : > { %p1516_p9 = scmp.ge.s32.totalorder %s1105_s29, 2  ;;  %s640_s30 = scalar_lea.sflag [#allocation4], %s639_s10 }
 0x26c   : > { %p852_p10 = pnand %p1516_p9, %p1515_p6 }
 0x26e   : > { %1080 = dma.done.wait (!%p852_p10), %s640_s30, 512  }
 0x26f   : > { %1082 = vsyncadd (!%p852_p10), %s640_s30, 4294966784  ;;  %s26_s29 = sadd.s32 1, %s1105_s29   ;;  %s1517_s15 = sld [smem:[#allocation17_spill]] }
 0x270   : > { %p23_p11 = scmp.ge.s32.totalorder %s26_s29, 4   ;;  %s1518_s24 = smov %s1089_s25 }
 0x271   : > { %s1519_s25 = smov %s1093_s26  ;;  %s1520_s26 = smov %s1299_s16 }
 0x272   : > { %s1521_s27 = smov %s1101_s28  ;;  %25 = sbr.rel (!%p23_p11) target bundleno = 14 (0xe), region = 113 }
 0x275   : > { %s1522_s28 = smov %s1517_s15 }
 0x279   :  { %645 = vsyncpa [#allocation3], 1 }
 0x27a   :  { %647 = vsyncpa [#allocation3 + $0x1], 1 }
 0x27b   :  { %648 = vsyncpa [#allocation10], 1 }
 0x27c   :  { %649 = vsyncpa [#allocation4], 1 }
 0x27d   :  { %651 = vsyncpa [#allocation4 + $0x1], 1 }
 0x27e   :  { %652 = vsyncpa [#allocation5], 1 }
 0x27f   :  { %654 = vsyncpa [#allocation5 + $0x1], 1 }
 0x280   :  { %655 = vsyncpa [#allocation6], 1 }
 0x281   :  { %657 = vsyncpa [#allocation6 + $0x1], 1 }

</bundles_post_ra>
